<compile_context>
chip_gen: v7x
topology: tpu7x:2x2x1
jax: 0.10.0
libtpu: 0.0.40
codegen_flags: <defaults>
</compile_context>

<pallas_src>
import jax
import jax.numpy as jnp
from jax.experimental import pallas as pl
from jax.experimental.pallas import tpu as pltpu

PAU_M = 5          # nominator polynomial size (degree 5 -> 6 coeffs)
PAU_N = 4          # denominator polynomial size (4 coeffs, degrees 1..4)
PAU_EPS = 1e-8


def _round_up(x, m):
    return ((x + m - 1) // m) * m


def _pau(x, nom_ref, den_ref):
    """Pade Activation Unit, efficient-variant semantics (no abs on denom).

    Horner form: numerator = c5 x^5 + ... + c1 x + c0,
                 denominator = d3 x^4 + d2 x^3 + d1 x^2 + d0 x + 1.
    Coefficients are SMEM scalars; division goes to the EUP as an approx
    reciprocal (otherwise-idle unit in this kernel).
    """
    num = nom_ref[5]
    num = num * x + nom_ref[4]
    num = num * x + nom_ref[3]
    num = num * x + nom_ref[2]
    num = num * x + nom_ref[1]
    num = num * x + nom_ref[0]

    den = den_ref[3]
    den = den * x + den_ref[2]
    den = den * x + den_ref[1]
    den = den * x + den_ref[0]
    den = den * x + 1.0

    return num * pl.reciprocal(jnp.maximum(den, PAU_EPS), approx=True)


def dqn_kernel(x_ref,
               w0_ref, b0_ref,
               w1_ref, b1_ref,
               w2_ref, b2_ref,
               nom0_ref, den0_ref,
               nom1_ref, den1_ref,
               out_ref):
    # layer 0: Linear(state_size, hidsize) + PAU   (bf16 MXU inputs, f32 acc)
    h = jnp.dot(x_ref[...], w0_ref[...], preferred_element_type=jnp.float32)
    h = h + b0_ref[...]
    h = _pau(h, nom0_ref, den0_ref)

    # layer 1: Linear(hidsize, hidsize) + PAU
    h = jnp.dot(h.astype(jnp.bfloat16), w1_ref[...],
                preferred_element_type=jnp.float32)
    h = h + b1_ref[...]
    h = _pau(h, nom1_ref, den1_ref)

    # final layer: Linear(hidsize, action_size_padded), no activation
    o = jnp.dot(h.astype(jnp.bfloat16), w2_ref[...],
                preferred_element_type=jnp.float32)
    out_ref[...] = (o + b2_ref[...]).astype(out_ref.dtype)


def dqn_forward(x, params, *, tb=1024):
    """params = (w0, b0, w1, b1, w2, b2, nom0, den0, nom1, den1)."""
    w0, b0, w1, b1, w2, b2, nom0, den0, nom1, den1 = params
    B, STATE = x.shape
    HID = w0.shape[1]
    ACT = w2.shape[1]
    ACT_PAD = _round_up(ACT, 128)          # lane-dense output width
    bf = jnp.bfloat16

    # zero-pad the final layer to a lane-dense width (stores become unmasked)
    w2p = jnp.zeros((HID, ACT_PAD), jnp.float32).at[:, :ACT].set(w2)
    b2p = jnp.zeros((1, ACT_PAD), jnp.float32).at[:, :ACT].set(b2)

    # batch tiling: TB is a multiple of 8, batch padded to a multiple of TB
    TB = min(tb, _round_up(B, 8))
    Bp = _round_up(B, TB)
    xp = x if Bp == B else jnp.zeros((Bp, STATE), x.dtype).at[:B].set(x)

    vmem_resident = lambda shape: pl.BlockSpec(shape, lambda i: (0, 0))
    smem = pl.BlockSpec(memory_space=pltpu.MemorySpace.SMEM)

    out = pl.pallas_call(
        dqn_kernel,
        out_shape=jax.ShapeDtypeStruct((Bp, ACT_PAD), jnp.float32),
        grid=(Bp // TB,),
        in_specs=[
            pl.BlockSpec((TB, STATE), lambda i: (i, 0)),   # x (batch-blocked)
            vmem_resident((STATE, HID)),                   # w0
            vmem_resident((1, HID)),                       # b0
            vmem_resident((HID, HID)),                     # w1
            vmem_resident((1, HID)),                       # b1
            vmem_resident((HID, ACT_PAD)),                 # w2 (lane-padded)
            vmem_resident((1, ACT_PAD)),                   # b2 (lane-padded)
            smem, smem,                                    # nom0, den0
            smem, smem,                                    # nom1, den1
        ],
        out_specs=pl.BlockSpec((TB, ACT_PAD), lambda i: (i, 0)),
        compiler_params=pltpu.CompilerParams(
            dimension_semantics=("parallel",),
            vmem_limit_bytes=32 * 1024 * 1024,
        ),
    )(xp.astype(bf),
      w0.astype(bf), b0,
      w1.astype(bf), b1,
      w2p.astype(bf), b2p,
      nom0, den0, nom1, den1)

    return out[:B, :ACT]


# ---------------- parameter construction (deterministic, synthetic) ----------

def xavier_uniform(key, fan_in, fan_out):
    # gain('linear') == 1.0
    bound = jnp.sqrt(6.0 / (fan_in + fan_out))
    # stored as [in, out] (transposed w.r.t. PyTorch's [out, in])
    return jax.random.uniform(key, (fan_in, fan_out), jnp.float32, -bound, bound)


def linear_bias(key, fan_in, fan_out):
    bound = 1.0 / jnp.sqrt(jnp.float32(fan_in))   # PyTorch default bias init
    return jax.random.uniform(key, (1, fan_out), jnp.float32, -bound, bound)


def make_params(state_size, hidsize, action_size):
    key = jax.random.PRNGKey(0)
    k = jax.random.split(key, 6)
    w0 = xavier_uniform(k[0], state_size, hidsize)
    b0 = linear_bias(k[1], state_size, hidsize)
    w1 = xavier_uniform(k[2], hidsize, hidsize)
    b1 = linear_bias(k[3], hidsize, hidsize)
    w2 = xavier_uniform(k[4], hidsize, action_size)
    b2 = linear_bias(k[5], hidsize, action_size)

    # PAU "relu-like" initial coefficients (deterministic constants),
    # matching the (m+1,)- and (n,)-sized initial_weights fed to the module.
    nom = jnp.array([0.02996348, 0.61690165, 2.37539147,
                     3.06608078, 1.52474449, 0.25281987], dtype=jnp.float32)
    den = jnp.array([1.19160814, 4.40811795, 0.91111034, 0.34885983],
                    dtype=jnp.float32)
    # two activations -> len(initial_weights) == 2
    nom0, den0 = nom, den
    nom1, den1 = nom * 1.05, den * 0.95   # slightly different, still deterministic
    return (w0, b0, w1, b1, w2, b2, nom0, den0, nom1, den1)


# ---------------- pure-JAX reference for verification ------------------------

def pau_ref(x, nom, den):
    # Efficient-variant PAU semantics (denominator + 1, clamp(min=eps), no abs),
    # matching the PyTorch module.  Exact division (no approx reciprocal).
    num = jnp.full_like(x, nom[0])
    d = jnp.zeros_like(x)
    for i in range(1, PAU_M + 1):
        xp = x ** i
        num = num + xp * nom[i]
        if i < PAU_N + 1:
            d = d + xp * den[i - 1]
    d = d + 1.0
    return num / jnp.maximum(d, PAU_EPS)


def dqn_ref(x, params):
    # Mirrors the kernel's bf16 matmul inputs / f32 accumulation so the
    # comparison isolates kernel arithmetic; PAU uses exact division.
    w0, b0, w1, b1, w2, b2, nom0, den0, nom1, den1 = params
    bf = jnp.bfloat16
    h = jnp.dot(x.astype(bf), w0.astype(bf),
                preferred_element_type=jnp.float32) + b0
    h = pau_ref(h, nom0, den0)
    h = jnp.dot(h.astype(bf), w1.astype(bf),
                preferred_element_type=jnp.float32) + b1
    h = pau_ref(h, nom1, den1)
    return jnp.dot(h.astype(bf), w2.astype(bf),
                   preferred_element_type=jnp.float32) + b2


if __name__ == "__main__":
    STATE, HID, ACT = 32, 128, 8
    params = make_params(STATE, HID, ACT)

    # small test: single grid step (B == TB)
    B = 8
    x = jax.random.normal(jax.random.PRNGKey(1), (B, STATE), dtype=jnp.float32)
    out = jax.block_until_ready(dqn_forward(x, params))
    ref = dqn_ref(x, params)
    assert out.shape == (B, ACT)
    assert jnp.allclose(out, ref, atol=1e-2, rtol=1e-2), "mismatch vs JAX reference (B=8)"

    # multi-block test: exercises batch grid, pipelining and ragged-batch padding
    B2 = 300
    x2 = jax.random.normal(jax.random.PRNGKey(2), (B2, STATE), dtype=jnp.float32)
    out2 = jax.block_until_ready(dqn_forward(x2, params, tb=128))
    ref2 = dqn_ref(x2, params)
    assert out2.shape == (B2, ACT)
    assert jnp.allclose(out2, ref2, atol=1e-2, rtol=1e-2), "mismatch vs JAX reference (B=300)"

    print("KERNEL_OK")
</pallas_src>

<mosaic_0001>
module attributes {stable_mosaic.version = 11 : i64} {
  func.func @dqn_kernel(%arg0: i32, %arg1: memref<8x32xbf16, #tpu.memory_space<vmem>>, %arg2: memref<32x128xbf16, #tpu.memory_space<vmem>>, %arg3: memref<1x128xf32, #tpu.memory_space<vmem>>, %arg4: memref<128x128xbf16, #tpu.memory_space<vmem>>, %arg5: memref<1x128xf32, #tpu.memory_space<vmem>>, %arg6: memref<128x128xbf16, #tpu.memory_space<vmem>>, %arg7: memref<1x128xf32, #tpu.memory_space<vmem>>, %arg8: memref<6xf32, #tpu.memory_space<smem>>, %arg9: memref<4xf32, #tpu.memory_space<smem>>, %arg10: memref<6xf32, #tpu.memory_space<smem>>, %arg11: memref<4xf32, #tpu.memory_space<smem>>, %arg12: memref<8x128xf32, #tpu.memory_space<vmem>>) attributes {dimension_semantics = [#tpu.dimension_semantics<parallel>], iteration_bounds = array<i64: 1>, scalar_prefetch = 0 : i64, scratch_operands = 0 : i64, tpu.core_type = #tpu.core_type<tc>, window_params = [{transform_indices = @transform_0, window_bounds = array<i64: 8, 32>}, {pipeline_mode = #tpu.pipeline_mode<synchronous>, transform_indices = @transform_1, window_bounds = array<i64: 32, 128>}, {pipeline_mode = #tpu.pipeline_mode<synchronous>, transform_indices = @transform_2, window_bounds = array<i64: 1, 128>}, {pipeline_mode = #tpu.pipeline_mode<synchronous>, transform_indices = @transform_3, window_bounds = array<i64: 128, 128>}, {pipeline_mode = #tpu.pipeline_mode<synchronous>, transform_indices = @transform_4, window_bounds = array<i64: 1, 128>}, {pipeline_mode = #tpu.pipeline_mode<synchronous>, transform_indices = @transform_5, window_bounds = array<i64: 128, 128>}, {pipeline_mode = #tpu.pipeline_mode<synchronous>, transform_indices = @transform_6, window_bounds = array<i64: 1, 128>}, {transform_indices = @transform_7, window_bounds = array<i64: 6>}, {transform_indices = @transform_8, window_bounds = array<i64: 4>}, {transform_indices = @transform_9, window_bounds = array<i64: 6>}, {transform_indices = @transform_10, window_bounds = array<i64: 4>}, {transform_indices = @transform_11, window_bounds = array<i64: 8, 128>}]} {
    %c0 = arith.constant 0 : index
    %c0_0 = arith.constant 0 : index
    %0 = vector.load %arg1[%c0, %c0_0] : memref<8x32xbf16, #tpu.memory_space<vmem>>, vector<8x32xbf16>
    %c0_1 = arith.constant 0 : index
    %c0_2 = arith.constant 0 : index
    %1 = vector.load %arg2[%c0_1, %c0_2] : memref<32x128xbf16, #tpu.memory_space<vmem>>, vector<32x128xbf16>
    %cst = arith.constant dense<0.000000e+00> : vector<8x128xf32>
    %2 = tpu.matmul %0, %1, %cst {dimension_numbers = #tpu.dot_dimension_numbers<[1], [0], [0], [1], [0, 0, 1, 1], [], []>} : vector<8x32xbf16>, vector<32x128xbf16>, vector<8x128xf32> -> vector<8x128xf32>
    %c0_3 = arith.constant 0 : index
    %c0_4 = arith.constant 0 : index
    %3 = vector.load %arg3[%c0_3, %c0_4] : memref<1x128xf32, #tpu.memory_space<vmem>>, vector<1x128xf32>
    %4 = vector.broadcast %3 : vector<1x128xf32> to vector<8x128xf32>
    %5 = arith.addf %2, %4 : vector<8x128xf32>
    %c5 = arith.constant 5 : index
    %6 = memref.load %arg8[%c5] : memref<6xf32, #tpu.memory_space<smem>>
    %7 = vector.broadcast %6 : f32 to vector<8x128xf32>
    %8 = arith.mulf %7, %5 : vector<8x128xf32>
    %c4 = arith.constant 4 : index
    %9 = memref.load %arg8[%c4] : memref<6xf32, #tpu.memory_space<smem>>
    %10 = vector.broadcast %9 : f32 to vector<8x128xf32>
    %11 = arith.addf %8, %10 : vector<8x128xf32>
    %12 = arith.mulf %11, %5 : vector<8x128xf32>
    %c3 = arith.constant 3 : index
    %13 = memref.load %arg8[%c3] : memref<6xf32, #tpu.memory_space<smem>>
    %14 = vector.broadcast %13 : f32 to vector<8x128xf32>
    %15 = arith.addf %12, %14 : vector<8x128xf32>
    %16 = arith.mulf %15, %5 : vector<8x128xf32>
    %c2 = arith.constant 2 : index
    %17 = memref.load %arg8[%c2] : memref<6xf32, #tpu.memory_space<smem>>
    %18 = vector.broadcast %17 : f32 to vector<8x128xf32>
    %19 = arith.addf %16, %18 : vector<8x128xf32>
    %20 = arith.mulf %19, %5 : vector<8x128xf32>
    %c1 = arith.constant 1 : index
    %21 = memref.load %arg8[%c1] : memref<6xf32, #tpu.memory_space<smem>>
    %22 = vector.broadcast %21 : f32 to vector<8x128xf32>
    %23 = arith.addf %20, %22 : vector<8x128xf32>
    %24 = arith.mulf %23, %5 : vector<8x128xf32>
    %c0_5 = arith.constant 0 : index
    %25 = memref.load %arg8[%c0_5] : memref<6xf32, #tpu.memory_space<smem>>
    %26 = vector.broadcast %25 : f32 to vector<8x128xf32>
    %27 = arith.addf %24, %26 : vector<8x128xf32>
    %c3_6 = arith.constant 3 : index
    %28 = memref.load %arg9[%c3_6] : memref<4xf32, #tpu.memory_space<smem>>
    %29 = vector.broadcast %28 : f32 to vector<8x128xf32>
    %30 = arith.mulf %29, %5 : vector<8x128xf32>
    %c2_7 = arith.constant 2 : index
    %31 = memref.load %arg9[%c2_7] : memref<4xf32, #tpu.memory_space<smem>>
    %32 = vector.broadcast %31 : f32 to vector<8x128xf32>
    %33 = arith.addf %30, %32 : vector<8x128xf32>
    %34 = arith.mulf %33, %5 : vector<8x128xf32>
    %c1_8 = arith.constant 1 : index
    %35 = memref.load %arg9[%c1_8] : memref<4xf32, #tpu.memory_space<smem>>
    %36 = vector.broadcast %35 : f32 to vector<8x128xf32>
    %37 = arith.addf %34, %36 : vector<8x128xf32>
    %38 = arith.mulf %37, %5 : vector<8x128xf32>
    %c0_9 = arith.constant 0 : index
    %39 = memref.load %arg9[%c0_9] : memref<4xf32, #tpu.memory_space<smem>>
    %40 = vector.broadcast %39 : f32 to vector<8x128xf32>
    %41 = arith.addf %38, %40 : vector<8x128xf32>
    %42 = arith.mulf %41, %5 : vector<8x128xf32>
    %cst_10 = arith.constant 1.000000e+00 : f32
    %43 = vector.broadcast %cst_10 : f32 to vector<8x128xf32>
    %44 = arith.addf %42, %43 : vector<8x128xf32>
    %cst_11 = arith.constant 9.99999993E-9 : f32
    %45 = vector.broadcast %cst_11 : f32 to vector<8x128xf32>
    %46 = arith.maximumf %44, %45 : vector<8x128xf32>
    %47 = tpu.reciprocal %46 {approx = true} : vector<8x128xf32> -> vector<8x128xf32>
    %48 = arith.mulf %27, %47 : vector<8x128xf32>
    %49 = arith.truncf %48 : vector<8x128xf32> to vector<8x128xbf16>
    %c0_12 = arith.constant 0 : index
    %c0_13 = arith.constant 0 : index
    %50 = vector.load %arg4[%c0_12, %c0_13] : memref<128x128xbf16, #tpu.memory_space<vmem>>, vector<128x128xbf16>
    %cst_14 = arith.constant dense<0.000000e+00> : vector<8x128xf32>
    %51 = tpu.matmul %49, %50, %cst_14 {dimension_numbers = #tpu.dot_dimension_numbers<[1], [0], [0], [1], [0, 0, 1, 1], [], []>} : vector<8x128xbf16>, vector<128x128xbf16>, vector<8x128xf32> -> vector<8x128xf32>
    %c0_15 = arith.constant 0 : index
    %c0_16 = arith.constant 0 : index
    %52 = vector.load %arg5[%c0_15, %c0_16] : memref<1x128xf32, #tpu.memory_space<vmem>>, vector<1x128xf32>
    %53 = vector.broadcast %52 : vector<1x128xf32> to vector<8x128xf32>
    %54 = arith.addf %51, %53 : vector<8x128xf32>
    %c5_17 = arith.constant 5 : index
    %55 = memref.load %arg10[%c5_17] : memref<6xf32, #tpu.memory_space<smem>>
    %56 = vector.broadcast %55 : f32 to vector<8x128xf32>
    %57 = arith.mulf %56, %54 : vector<8x128xf32>
    %c4_18 = arith.constant 4 : index
    %58 = memref.load %arg10[%c4_18] : memref<6xf32, #tpu.memory_space<smem>>
    %59 = vector.broadcast %58 : f32 to vector<8x128xf32>
    %60 = arith.addf %57, %59 : vector<8x128xf32>
    %61 = arith.mulf %60, %54 : vector<8x128xf32>
    %c3_19 = arith.constant 3 : index
    %62 = memref.load %arg10[%c3_19] : memref<6xf32, #tpu.memory_space<smem>>
    %63 = vector.broadcast %62 : f32 to vector<8x128xf32>
    %64 = arith.addf %61, %63 : vector<8x128xf32>
    %65 = arith.mulf %64, %54 : vector<8x128xf32>
    %c2_20 = arith.constant 2 : index
    %66 = memref.load %arg10[%c2_20] : memref<6xf32, #tpu.memory_space<smem>>
    %67 = vector.broadcast %66 : f32 to vector<8x128xf32>
    %68 = arith.addf %65, %67 : vector<8x128xf32>
    %69 = arith.mulf %68, %54 : vector<8x128xf32>
    %c1_21 = arith.constant 1 : index
    %70 = memref.load %arg10[%c1_21] : memref<6xf32, #tpu.memory_space<smem>>
    %71 = vector.broadcast %70 : f32 to vector<8x128xf32>
    %72 = arith.addf %69, %71 : vector<8x128xf32>
    %73 = arith.mulf %72, %54 : vector<8x128xf32>
    %c0_22 = arith.constant 0 : index
    %74 = memref.load %arg10[%c0_22] : memref<6xf32, #tpu.memory_space<smem>>
    %75 = vector.broadcast %74 : f32 to vector<8x128xf32>
    %76 = arith.addf %73, %75 : vector<8x128xf32>
    %c3_23 = arith.constant 3 : index
    %77 = memref.load %arg11[%c3_23] : memref<4xf32, #tpu.memory_space<smem>>
    %78 = vector.broadcast %77 : f32 to vector<8x128xf32>
    %79 = arith.mulf %78, %54 : vector<8x128xf32>
    %c2_24 = arith.constant 2 : index
    %80 = memref.load %arg11[%c2_24] : memref<4xf32, #tpu.memory_space<smem>>
    %81 = vector.broadcast %80 : f32 to vector<8x128xf32>
    %82 = arith.addf %79, %81 : vector<8x128xf32>
    %83 = arith.mulf %82, %54 : vector<8x128xf32>
    %c1_25 = arith.constant 1 : index
    %84 = memref.load %arg11[%c1_25] : memref<4xf32, #tpu.memory_space<smem>>
    %85 = vector.broadcast %84 : f32 to vector<8x128xf32>
    %86 = arith.addf %83, %85 : vector<8x128xf32>
    %87 = arith.mulf %86, %54 : vector<8x128xf32>
    %c0_26 = arith.constant 0 : index
    %88 = memref.load %arg11[%c0_26] : memref<4xf32, #tpu.memory_space<smem>>
    %89 = vector.broadcast %88 : f32 to vector<8x128xf32>
    %90 = arith.addf %87, %89 : vector<8x128xf32>
    %91 = arith.mulf %90, %54 : vector<8x128xf32>
    %cst_27 = arith.constant 1.000000e+00 : f32
    %92 = vector.broadcast %cst_27 : f32 to vector<8x128xf32>
    %93 = arith.addf %91, %92 : vector<8x128xf32>
    %cst_28 = arith.constant 9.99999993E-9 : f32
    %94 = vector.broadcast %cst_28 : f32 to vector<8x128xf32>
    %95 = arith.maximumf %93, %94 : vector<8x128xf32>
    %96 = tpu.reciprocal %95 {approx = true} : vector<8x128xf32> -> vector<8x128xf32>
    %97 = arith.mulf %76, %96 : vector<8x128xf32>
    %98 = arith.truncf %97 : vector<8x128xf32> to vector<8x128xbf16>
    %c0_29 = arith.constant 0 : index
    %c0_30 = arith.constant 0 : index
    %99 = vector.load %arg6[%c0_29, %c0_30] : memref<128x128xbf16, #tpu.memory_space<vmem>>, vector<128x128xbf16>
    %cst_31 = arith.constant dense<0.000000e+00> : vector<8x128xf32>
    %100 = tpu.matmul %98, %99, %cst_31 {dimension_numbers = #tpu.dot_dimension_numbers<[1], [0], [0], [1], [0, 0, 1, 1], [], []>} : vector<8x128xbf16>, vector<128x128xbf16>, vector<8x128xf32> -> vector<8x128xf32>
    %c0_32 = arith.constant 0 : index
    %c0_33 = arith.constant 0 : index
    %101 = vector.load %arg7[%c0_32, %c0_33] : memref<1x128xf32, #tpu.memory_space<vmem>>, vector<1x128xf32>
    %102 = vector.broadcast %101 : vector<1x128xf32> to vector<8x128xf32>
    %103 = arith.addf %100, %102 : vector<8x128xf32>
    %c0_34 = arith.constant 0 : index
    %c0_35 = arith.constant 0 : index
    %104 = vector.load %arg12[%c0_34, %c0_35] : memref<8x128xf32, #tpu.memory_space<vmem>>, vector<8x128xf32>
    tpu.vector_store %arg12[%c0_34, %c0_35], %103 {strides = array<i32>} : memref<8x128xf32, #tpu.memory_space<vmem>>, vector<8x128xf32>,
    return
  }
  func.func @transform_0(%arg0: i32) -> (i32, i32) {
    %c0_i32 = arith.constant 0 : i32
    %c0_i32_0 = arith.constant 0 : i32
    return %arg0, %c0_i32 : i32, i32
  }
  func.func @transform_1(%arg0: i32) -> (i32, i32) {
    %c0_i32 = arith.constant 0 : i32
    %c0_i32_0 = arith.constant 0 : i32
    %c0_i32_1 = arith.constant 0 : i32
    return %c0_i32, %c0_i32_0 : i32, i32
  }
  func.func @transform_2(%arg0: i32) -> (i32, i32) {
    %c0_i32 = arith.constant 0 : i32
    %c0_i32_0 = arith.constant 0 : i32
    %c0_i32_1 = arith.constant 0 : i32
    return %c0_i32, %c0_i32_0 : i32, i32
  }
  func.func @transform_3(%arg0: i32) -> (i32, i32) {
    %c0_i32 = arith.constant 0 : i32
    %c0_i32_0 = arith.constant 0 : i32
    %c0_i32_1 = arith.constant 0 : i32
    return %c0_i32, %c0_i32_0 : i32, i32
  }
  func.func @transform_4(%arg0: i32) -> (i32, i32) {
    %c0_i32 = arith.constant 0 : i32
    %c0_i32_0 = arith.constant 0 : i32
    %c0_i32_1 = arith.constant 0 : i32
    return %c0_i32, %c0_i32_0 : i32, i32
  }
  func.func @transform_5(%arg0: i32) -> (i32, i32) {
    %c0_i32 = arith.constant 0 : i32
    %c0_i32_0 = arith.constant 0 : i32
    %c0_i32_1 = arith.constant 0 : i32
    return %c0_i32, %c0_i32_0 : i32, i32
  }
  func.func @transform_6(%arg0: i32) -> (i32, i32) {
    %c0_i32 = arith.constant 0 : i32
    %c0_i32_0 = arith.constant 0 : i32
    %c0_i32_1 = arith.constant 0 : i32
    return %c0_i32, %c0_i32_0 : i32, i32
  }
  func.func @transform_7(%arg0: i32) -> i32 {
    %c0_i32 = arith.constant 0 : i32
    %c0_i32_0 = arith.constant 0 : i32
    return %c0_i32 : i32
  }
  func.func @transform_8(%arg0: i32) -> i32 {
    %c0_i32 = arith.constant 0 : i32
    %c0_i32_0 = arith.constant 0 : i32
    return %c0_i32 : i32
  }
  func.func @transform_9(%arg0: i32) -> i32 {
    %c0_i32 = arith.constant 0 : i32
    %c0_i32_0 = arith.constant 0 : i32
    return %c0_i32 : i32
  }
  func.func @transform_10(%arg0: i32) -> i32 {
    %c0_i32 = arith.constant 0 : i32
    %c0_i32_0 = arith.constant 0 : i32
    return %c0_i32 : i32
  }
  func.func @transform_11(%arg0: i32) -> (i32, i32) {
    %c0_i32 = arith.constant 0 : i32
    %c0_i32_0 = arith.constant 0 : i32
    return %arg0, %c0_i32 : i32, i32
  }
}

</mosaic_0001>

<bundles_post_ra>
// kernel: tpu_custom_call.1
= control target key start
LH: loop header
LB: loop body
LE: loop exit
PB: predicated region body
PF: predicated region fallthrough
CT: control target
= control target key end

     0   :  { %16 = vsyncpa [#allocation3], 0  ;;  %s1041_s0 = inlined_call_operand.hbm [shape: bf16[8,32], index: 0, kind: input, shape index: {}]   ;;  %s1042_s1 = inlined_call_operand.hbm [shape: bf16[32,128], index: 1, kind: input, shape index: {}]   ;;  %s1043_s2 = inlined_call_operand.vmem [shape: f32[1,128], index: 2, kind: input, shape index: {}]   ;;  %s1044_s3 = inlined_call_operand.hbm [shape: bf16[128,128], index: 3, kind: input, shape index: {}]   ;;  %s1045_s4 = inlined_call_operand.vmem [shape: f32[1,128], index: 4, kind: input, shape index: {}]   ;;  %s1046_s5 = inlined_call_operand.hbm [shape: bf16[128,128], index: 5, kind: input, shape index: {}]   ;;  %s1047_s6 = inlined_call_operand.vmem [shape: f32[1,128], index: 6, kind: input, shape index: {}]   ;;  %s1048_s7 = inlined_call_operand.vmem [shape: f32[6], index: 7, kind: input, shape index: {}]   ;;  %s1049_s8 = inlined_call_operand.vmem [shape: f32[4], index: 8, kind: input, shape index: {}]   ;;  %s1050_s9 = inlined_call_operand.vmem [shape: f32[6], index: 9, kind: input, shape index: {}]   ;;  %s1051_s10 = inlined_call_operand.vmem [shape: f32[4], index: 10, kind: input, shape index: {}]   ;;  %s1052_s11 = inlined_call_operand.hbm [shape: f32[8,128], index: 11, kind: output, shape index: {}]  }
   0x1   :  { %17 = vsyncpa [#allocation7], 0 }
   0x2   :  { %18 = vsyncpa [#allocation10], 0 }
   0x3   :  { %19 = vsyncpa [#allocation5], 0 }
   0x4   :  { %20 = vsyncpa [#allocation13], 0 }
   0x5   :  { %21 = vsyncpa [#allocation16], 0 }
   0x6   :  { %22 = vsyncpa [#allocation4], 0  ;;  %s850_s17 = smov [#allocation6]   ;;  %s91_s21 = sshll.u32 %s1049_s8, 4  ;;  %s92_s21 = int_to_ptr.vmem [resolvable:$true] %s91_s21 }
   0x7   :  { %s38_s18 = sshll.u32 %s850_s17, 4  ;;  %s678_s24 = scalar_lea.hbm %s1042_s1, 256  ;;  %s39_s18 = int_to_ptr.vmem [resolvable:$true] %s38_s18 }
   0x8   :  { %p679_p0 = scmp.ne.s32.totalorder %s1042_s1, %s678_s24  ;;  %p682_p1 = scmp.lt.u32.totalorder %s678_s24, %s1042_s1 }
   0xa   :  { %p684_p2 = pnand %p682_p1, %p679_p0 }
   0xc   :  { %687 = shalt.err (!%p684_p2)
}
   0xd   :  { %s688_s29 = scalar_lea.vmem %s39_s18, 256  ;;  %p693_p4 = scmp.lt.s32.totalorder %s39_s18, %s39_s18 }
   0xe   :  { %p689_p3 = scmp.ne.s32.totalorder %s39_s18, %s688_s29  ;;  %p694_p5 = scmp.lt.s32.totalorder %s688_s29, %s688_s29 }
  0x10   :  { %p695_p6 = por %p694_p5, %p693_p4 }
  0x12   :  { %p696_p7 = pnand %p695_p6, %p689_p3 }
  0x14   :  { %699 = shalt.err (!%p696_p7)
}
  0x15   :  { %s851_s8 = smov 64   ;;  %s852_s30 = smov 4  }
  0x16   :  { %44 = dma.hbm_to_vmem [thread:$0]  %s1042_s1, 256, %s39_s18, [#allocation7], %s851_s8, %s851_s8, %s852_s30  }
  0x17   :  { %s700_s14 = scalar_lea.vmem %s92_s21, 16  ;;  %p705_p9 = scmp.lt.s32.totalorder %s92_s21, %s92_s21 }
  0x18   :  { %p701_p8 = scmp.ne.s32.totalorder %s92_s21, %s700_s14  ;;  %p706_p10 = scmp.lt.s32.totalorder %s700_s14, %s700_s14 }
  0x1a   :  { %p707_p11 = por %p706_p10, %p705_p9 }
  0x1c   :  { %p708_p12 = pnand %p707_p11, %p701_p8 }
  0x1e   :  { %711 = shalt.err (!%p708_p12)
}
  0x1f   :  { %s853_s15 = smov [#allocation12]   ;;  %s854_s16 = smov [#allocation2]  }
  0x20   :  { %94 = dma.vmem_to_smem %s92_s21, 16, %s853_s15, [#allocation13]  }
  0x21   :  { %s29_s17 = sshll.u32 %s854_s16, 4  ;;  %s855_s19 = smov [#allocation8]   ;;  %s30_s17 = int_to_ptr.vmem [resolvable:$true] %s29_s17 }
  0x22   :  { %s52_s20 = sshll.u32 %s855_s19, 4  ;;  %s712_s1 = scalar_lea.hbm %s1041_s0, 64  ;;  %s941_s20 = int_to_ptr.vmem [resolvable:$true] %s52_s20 }
  0x23   :  { %p713_p13 = scmp.ne.s32.totalorder %s1041_s0, %s712_s1  ;;  %p716_p0 = scmp.lt.u32.totalorder %s712_s1, %s1041_s0 }
  0x25   :  { %p718_p1 = pnand %p716_p0, %p713_p13 }
  0x27   :  { %721 = shalt.err (!%p718_p1)
}
  0x28   :  { %s722_s21 = scalar_lea.vmem %s30_s17, 64  ;;  %p727_p3 = scmp.lt.s32.totalorder %s30_s17, %s30_s17 }
  0x29   :  { %p723_p2 = scmp.ne.s32.totalorder %s30_s17, %s722_s21  ;;  %p728_p4 = scmp.lt.s32.totalorder %s722_s21, %s722_s21 }
  0x2b   :  { %p729_p5 = por %p728_p4, %p727_p3 }
  0x2d   :  { %p730_p6 = pnand %p729_p5, %p723_p2 }
  0x2f   :  { %733 = shalt.err (!%p730_p6)
}
  0x30   :  { %32 = dma.hbm_to_vmem [thread:$0]  %s1041_s0, 64, %s30_s17, [#allocation3]  }
  0x31   :  { %s734_s13 = scalar_lea.hbm %s1044_s3, 1024 }
  0x32   :  { %p735_p7 = scmp.ne.s32.totalorder %s1044_s3, %s734_s13  ;;  %p738_p8 = scmp.lt.u32.totalorder %s734_s13, %s1044_s3 }
  0x34   :  { %p740_p9 = pnand %p738_p8, %p735_p7 }
  0x36   :  { %743 = shalt.err (!%p740_p9)
}
  0x37   :  { %s744_s22 = scalar_lea.vmem %s941_s20, 1024  ;;  %p749_p11 = scmp.lt.s32.totalorder %s941_s20, %s941_s20 }
  0x38   :  { %p745_p10 = scmp.ne.s32.totalorder %s941_s20, %s744_s22  ;;  %p750_p12 = scmp.lt.s32.totalorder %s744_s22, %s744_s22 }
  0x3a   :  { %p751_p13 = por %p750_p12, %p749_p11 }
  0x3c   :  { %p752_p0 = pnand %p751_p13, %p745_p10 }
  0x3e   :  { %755 = shalt.err (!%p752_p0)
}
  0x3f   :  { %58 = dma.hbm_to_vmem [thread:$0]  %s1044_s3, 1024, %s941_s20, [#allocation7], %s851_s8, %s851_s8, %s852_s30  }
  0x40   :  { %s81_s18 = sshll.u32 %s1048_s7, 4  ;;  %s856_s24 = smov [#allocation9]   ;;  %s82_s18 = int_to_ptr.vmem [resolvable:$true] %s81_s18 }
  0x41   :  { %s66_s25 = sshll.u32 %s856_s24, 4  ;;  %s756_s27 = scalar_lea.hbm %s1046_s5, 1024  ;;  %s67_s25 = int_to_ptr.vmem [resolvable:$true] %s66_s25 }
  0x42   :  { %p757_p1 = scmp.ne.s32.totalorder %s1046_s5, %s756_s27  ;;  %p760_p2 = scmp.lt.u32.totalorder %s756_s27, %s1046_s5 }
  0x44   :  { %p762_p3 = pnand %p760_p2, %p757_p1 }
  0x46   :  { %765 = shalt.err (!%p762_p3)
}
  0x47   :  { %s766_s3 = scalar_lea.vmem %s67_s25, 1024  ;;  %p771_p5 = scmp.lt.s32.totalorder %s67_s25, %s67_s25 }
  0x48   :  { %p767_p4 = scmp.ne.s32.totalorder %s67_s25, %s766_s3  ;;  %p772_p6 = scmp.lt.s32.totalorder %s766_s3, %s766_s3 }
  0x4a   :  { %p773_p7 = por %p772_p6, %p771_p5 }
  0x4c   :  { %p774_p8 = pnand %p773_p7, %p767_p4 }
  0x4e   :  { %777 = shalt.err (!%p774_p8)
}
  0x4f   :  { %72 = dma.hbm_to_vmem [thread:$0]  %s1046_s5, 1024, %s67_s25, [#allocation10], %s851_s8, %s851_s8, %s852_s30  }
  0x50   :  { %s778_s14 = scalar_lea.vmem %s82_s18, 16  ;;  %p783_p10 = scmp.lt.s32.totalorder %s82_s18, %s82_s18 }
  0x51   :  { %p779_p9 = scmp.ne.s32.totalorder %s82_s18, %s778_s14  ;;  %p784_p11 = scmp.lt.s32.totalorder %s778_s14, %s778_s14 }
  0x53   :  { %p785_p12 = por %p784_p11, %p783_p10 }
  0x55   :  { %p786_p13 = pnand %p785_p12, %p779_p9 }
  0x57   :  { %789 = shalt.err (!%p786_p13)
}
  0x58   :  { %s857_s15 = smov [#allocation11]   ;;  %s101_s22 = sshll.u32 %s1050_s9, 4  ;;  %s102_s22 = int_to_ptr.vmem [resolvable:$true] %s101_s22 }
  0x59   :  { %84 = dma.vmem_to_smem %s82_s18, 16, %s857_s15, [#allocation5]  }
  0x5a   :  { %s111_s23 = sshll.u32 %s1051_s10, 4  ;;  %s790_s1 = scalar_lea.vmem %s102_s22, 16  ;;  %s112_s23 = int_to_ptr.vmem [resolvable:$true] %s111_s23 }
  0x5b   :  { %p791_p0 = scmp.ne.s32.totalorder %s102_s22, %s790_s1  ;;  %p795_p1 = scmp.lt.s32.totalorder %s102_s22, %s102_s22 }
  0x5c   :  { %p796_p2 = scmp.lt.s32.totalorder %s790_s1, %s790_s1 }
  0x5e   :  { %p797_p3 = por %p796_p2, %p795_p1 }
  0x60   :  { %p798_p4 = pnand %p797_p3, %p791_p0 }
  0x62   :  { %801 = shalt.err (!%p798_p4)
}
  0x63   :  { %s858_s5 = smov [#allocation14]   ;;  %s802_s8 = scalar_lea.vmem %s112_s23, 16 }
  0x64   :  { %104 = dma.vmem_to_smem %s102_s22, 16, %s858_s5, [#allocation13]  }
  0x65   :  { %p803_p5 = scmp.ne.s32.totalorder %s112_s23, %s802_s8  ;;  %p807_p6 = scmp.lt.s32.totalorder %s112_s23, %s112_s23 }
  0x66   :  { %p808_p7 = scmp.lt.s32.totalorder %s802_s8, %s802_s8 }
  0x68   :  { %p809_p8 = por %p808_p7, %p807_p6 }
  0x6a   :  { %p810_p9 = pnand %p809_p8, %p803_p5 }
  0x6c   :  { %813 = shalt.err (!%p810_p9)
}
  0x6d   :  { %s859_s9 = smov [#allocation15]  }
  0x6e   :  { %114 = dma.vmem_to_smem %s112_s23, 16, %s859_s9, [#allocation16]  }
  0x6f   :  { %836 = dma.done.wait [#allocation3], 64  }
  0x70   :  { %837 = vsyncadd [#allocation3], 4294967232 }
  0x71   :  { %838 = dma.done.wait [#allocation7], 1280  }
  0x72   :  { %839 = vsyncadd [#allocation7], 4294966016 }
  0x73   :  { %840 = dma.done.wait [#allocation10], 1024  }
  0x74   :  { %841 = vsyncadd [#allocation10], 4294966272 }
  0x75   :  { %842 = dma.done.wait [#allocation5], 16  }
  0x76   :  { %843 = vsyncadd [#allocation5], 4294967280 }
  0x77   :  { %844 = dma.done.wait [#allocation13], 32  }
  0x78   :  { %845 = vsyncadd [#allocation13], 4294967264 }
  0x79   :  { %846 = dma.done.wait [#allocation16], 16  }
  0x7a   :  { %847 = vsyncadd [#allocation16], 4294967280 }
  0x7b   :  { %139 = sfence }
  0x7c   :  { %v656_v0 = vld [vmem:[#allocation6] sm:$0xff]   ;;  %v860_v1 = vmov 0.0   ;;  %v657_v2 = vld [vmem:[#allocation6 + $0x8] sm:$0xff]   ;;  %vm861_vm0 = vmmov 0   ;;  %vm165_vm1 = vcmask 261120   ;;  %v658_v4 = vld [vmem:[#allocation8] sm:$0xff]  }
  0x7d   :  { %595 = vmatprep.subr.bf16.mxu0 %v860_v1  ;;  %603 = vmatprep.subr.bf16.mxu1 %v860_v1  ;;  %v141_v3 = vld [vmem:[#allocation2] sm:$0xf]  ;;  %v660_v6 = vld [vmem:[#allocation8 + $0x10] sm:$0xff]   ;;  %v661_v7 = vld [vmem:[#allocation8 + $0x18] sm:$0xff]   ;;  %s540_s10 = sld [smem:[#allocation11 + $0x5]]  ;;  %s545_s30 = sld [smem:[#allocation12 + $0x3]] }
  0x7e   :  { %596 = vmatpush3.bf16.msra.mxu0 %v656_v0  ;;  %599 = vmatprep.mubr.msk.bf16.mxu0 %vm861_vm0, %v860_v1  ;;  %v659_v5 = vld [vmem:[#allocation8 + $0x8] sm:$0xff]   ;;  %v662_v8 = vld [vmem:[#allocation8 + $0x20] sm:$0xff]   ;;  %v664_v10 = vld [vmem:[#allocation8 + $0x30] sm:$0xff]   ;;  %s541_s18 = sld [smem:[#allocation11 + $0x4]]  ;;  %s546_s24 = sld [smem:[#allocation12 + $0x2]] }
  0x7f   :  { %597 = vmatprep.subr.bf16.mxu0 %v860_v1  ;;  %619 = vmatprep.mubr.msk.bf16.mxu1 %vm861_vm0, %v860_v1  ;;  %v663_v9 = vld [vmem:[#allocation8 + $0x28] sm:$0xff]   ;;  %v665_v11 = vld [vmem:[#allocation8 + $0x38] sm:$0xff]   ;;  %s542_s21 = sld [smem:[#allocation11 + $0x3]]  ;;  %s547_s27 = sld [smem:[#allocation12 + $0x1]]  ;;  %v666_v50 = vld [vmem:[#allocation9] sm:$0xff]  }
  0x80   :  { %604 = vmatpush3.bf16.msra.mxu1 %v658_v4  ;;  %v536_v12 = vld [vmem:[%s1043_s2] ss:$0 sm:$0xff]  ;;  %s242_s28 = sld [smem:[#allocation12]]  ;;  %s543_s29 = sld [smem:[#allocation11 + $0x2]]  ;;  %v668_v52 = vld [vmem:[#allocation9 + $0x10] sm:$0xff]   ;;  %v669_v53 = vld [vmem:[#allocation9 + $0x18] sm:$0xff]  }
  0x81   :  { %605 = vmatprep.subr.bf16.mxu1 %v860_v1  ;;  %s544_s2 = sld [smem:[#allocation11 + $0x1]]  ;;  %s228_s12 = sld [smem:[#allocation11]]  ;;  %v667_v51 = vld [vmem:[#allocation9 + $0x8] sm:$0xff]   ;;  %v670_v54 = vld [vmem:[#allocation9 + $0x20] sm:$0xff]   ;;  %v672_v56 = vld [vmem:[#allocation9 + $0x30] sm:$0xff]  }
  0x82   :  { %598 = vmatpush3.bf16.msra.mxu0 %v657_v2  ;;  %v671_v55 = vld [vmem:[#allocation9 + $0x28] sm:$0xff]   ;;  %v673_v57 = vld [vmem:[#allocation9 + $0x38] sm:$0xff]   ;;  %s557_s13 = sld [smem:[#allocation14 + $0x5]]  ;;  %s562_s3 = sld [smem:[#allocation15 + $0x3]] }
  0x83   :  { %623 = vmatprep.subr.bf16.mxu0 %v860_v1  ;;  %v210_v14 = vstv %s540_s10  ;;  %v232_v15 = vstv %s545_s30  ;;  %s558_s7 = sld [smem:[#allocation14 + $0x4]]  ;;  %s563_s20 = sld [smem:[#allocation15 + $0x2]]  ;;  %v548_v58 = vld [vmem:[%s1045_s4] ss:$0 sm:$0xff] }
  0x84   :  { %606 = vmatpush3.bf16.msra.mxu1 %v659_v5  ;;  %v213_v19 = vstv %s541_s18  ;;  %v235_v20 = vstv %s546_s24  ;;  %s559_s16 = sld [smem:[#allocation14 + $0x3]]  ;;  %s564_s19 = sld [smem:[#allocation15 + $0x1]] }
  0x85   :  { %600 = vmatmul.mubr.msk.bf16.vlgmr.msra.gmra.mrb[0].mxu0 %vm165_vm1, %v141_v3  ;;  %607 = vmatprep.subr.bf16.mxu1 %v860_v1  ;;  %v217_v26 = vstv %s542_s21  ;;  %v239_v27 = vstv %s547_s27  ;;  %s395_s22 = sld [smem:[#allocation15]]  ;;  %s560_s0 = sld [smem:[#allocation14 + $0x2]] }
  0x86   :  { %639 = vmatprep.mubr.msk.bf16.mxu0 %vm861_vm0, %v860_v1  ;;  %v243_v32 = vstv %s242_s28  ;;  %v221_v34 = vstv %s543_s29  ;;  %624 = vmatpush3.bf16.msra.mxu0 %v666_v50  ;;  %s561_s4 = sld [smem:[#allocation14 + $0x1]]  ;;  %s381_s17 = sld [smem:[#allocation14]] }
  0x87   :  { %v225_v41 = vstv %s544_s2  ;;  %v229_v45 = vstv %s228_s12  ;;  %625 = vmatprep.subr.bf16.mxu0 %v860_v1  ;;  %s862_s5 = smov [#allocation17]  }
  0x88   :  { %608 = vmatpush3.bf16.msra.mxu1 %v660_v6  ;;  %v363_v60 = vstv %s557_s13  ;;  %v385_v61 = vstv %s562_s3  ;;  %s522_s8 = sshll.u32 %s862_s5, 4  ;;  %s523_s8 = int_to_ptr.vmem [resolvable:$true] %s522_s8 }
  0x89   :  { %609 = vmatprep.subr.bf16.mxu1 %v860_v1  ;;  %v366_v2 = vstv %s558_s7  ;;  %v388_v3 = vstv %s563_s20  ;;  %s814_s9 = scalar_lea.vmem %s523_s8, 128  ;;  %p819_p11 = scmp.lt.s32.totalorder %s523_s8, %s523_s8 }
  0x8a   :  { %626 = vmatpush3.bf16.msra.mxu0 %v667_v51  ;;  %p815_p10 = scmp.ne.s32.totalorder %s523_s8, %s814_s9  ;;  %p820_p12 = scmp.lt.s32.totalorder %s814_s9, %s814_s9 }
  0x8b   :  { %627 = vmatprep.subr.bf16.mxu0 %v860_v1 }
  0x8c   :  { %610 = vmatpush3.bf16.msra.mxu1 %v661_v7  ;;  %p821_p13 = por %p820_p12, %p819_p11 }
  0x8d   :  { %611 = vmatprep.subr.bf16.mxu1 %v860_v1 }
  0x8e   :  { %628 = vmatpush3.bf16.msra.mxu0 %v668_v52  ;;  %p822_p0 = pnand %p821_p13, %p815_p10 }
  0x8f   :  { %629 = vmatprep.subr.bf16.mxu0 %v860_v1 }
  0x90   :  { %612 = vmatpush3.bf16.msra.mxu1 %v662_v8  ;;  %v370_v8 = vstv %s559_s16 }
  0x91   :  { %613 = vmatprep.subr.bf16.mxu1 %v860_v1 }
  0x92   :  { %630 = vmatpush3.bf16.msra.mxu0 %v669_v53 }
  0x93   :  { %631 = vmatprep.subr.bf16.mxu0 %v860_v1 }
  0x94   :  { %614 = vmatpush3.bf16.msra.mxu1 %v663_v9  ;;  %v392_v9 = vstv %s564_s19 }
  0x95   :  { %615 = vmatprep.subr.bf16.mxu1 %v860_v1 }
  0x96   :  { %632 = vmatpush3.bf16.msra.mxu0 %v670_v54 }
  0x97   :  { %633 = vmatprep.subr.bf16.mxu0 %v860_v1 }
  0x98   :  { %616 = vmatpush3.bf16.msra.mxu1 %v664_v10 }
  0x99   :  { %617 = vmatprep.subr.bf16.mxu1 %v860_v1 }
  0x9a   :  { %634 = vmatpush3.bf16.msra.mxu0 %v671_v55 }
  0x9b   :  { %635 = vmatprep.subr.bf16.mxu0 %v860_v1 }
  0x9c   :  { %618 = vmatpush3.bf16.msra.mxu1 %v665_v11 }
  0x9e   :  { %636 = vmatpush3.bf16.msra.mxu0 %v672_v56 }
  0x9f   :  { %637 = vmatprep.subr.bf16.mxu0 %v860_v1 }
  0xa2   :  { %638 = vmatpush3.bf16.msra.mxu0 %v673_v57 }
 0x158   :  { %v203_v13 = vpop.f32.mrb[0].mxu0 }
 0x159   :  { %v204_v16 = vadd.f32 %v536_v12, %v203_v13  ;;  %v601_v17 = vpop.f32.mrb[1].mxu0 }
 0x15a   :  { %v206_v18 = vpop.f32.mrb[2].mxu0 }
 0x15b   :  { %v602_v21 = vpop.f32.mrb[3].mxu0  ;;  %v211_v22 = vmul.f32 %v210_v14, %v204_v16  ;;  %v233_v23 = vmul.f32 %v232_v15, %v204_v16  ;;  %v396_v14 = vstv %s395_s22 }
 0x15d   :  { %v214_v24 = vadd.f32 %v213_v19, %v211_v22  ;;  %v236_v25 = vadd.f32 %v235_v20, %v233_v23  ;;  %v378_v23 = vstv %s561_s4 }
 0x15f   :  { %v215_v28 = vmul.f32 %v214_v24, %v204_v16  ;;  %v237_v29 = vmul.f32 %v236_v25, %v204_v16 }
 0x161   :  { %v218_v30 = vadd.f32 %v217_v26, %v215_v28  ;;  %v240_v31 = vadd.f32 %v239_v27, %v237_v29  ;;  %v382_v27 = vstv %s381_s17 }
 0x163   :  { %v219_v33 = vmul.f32 %v218_v30, %v204_v16  ;;  %v241_v35 = vmul.f32 %v240_v31, %v204_v16 }
 0x165   :  { %v244_v36 = vadd.f32 %v243_v32, %v241_v35  ;;  %v222_v37 = vadd.f32 %v221_v34, %v219_v33  ;;  %v565_v32 = vld [vmem:[%s1047_s6] ss:$0 sm:$0xff] }
 0x167   :  { %v245_v38 = vmul.f32 %v244_v36, %v204_v16  ;;  %v223_v40 = vmul.f32 %v222_v37, %v204_v16 }
 0x169   :  { %v246_v39 = vadd.f32 1.0, %v245_v38  ;;  %v226_v43 = vadd.f32 %v225_v41, %v223_v40 }
 0x16b   :  { %v247_v42 = vmax.f32 %v246_v39, 1e-08  ;;  %v227_v44 = vmul.f32 %v226_v43, %v204_v16  ;;  %v374_v16 = vstv %s560_s0 }
 0x16d   :  { %674 = vrcp.f32 %v247_v42  ;;  %v230_v46 = vadd.f32 %v229_v45, %v227_v44 }
 0x177   :  { %v675_v47 = vpop.eup %674 }
 0x178   :  { %v249_v48 = vmul.f32 %v675_v47, %v230_v46 }
 0x17a   :  { %v250_v49 = vpack.c.bf16 %v249_v48, %v249_v48 }
 0x17c   :  { %620 = vmatmul.mubr.bf16.vlgmr.msra.gmra.mrb[0].mxu1 %v250_v49 }
 0x24f   :  { %v356_v59 = vpop.f32.mrb[0].mxu1 }
 0x250   :  { %v357_v62 = vadd.f32 %v548_v58, %v356_v59  ;;  %v621_v63 = vpop.f32.mrb[1].mxu1 }
 0x251   :  { %v359_v0 = vpop.f32.mrb[2].mxu1 }
 0x252   :  { %v622_v1 = vpop.f32.mrb[3].mxu1  ;;  %v364_v4 = vmul.f32 %v363_v60, %v357_v62  ;;  %v386_v5 = vmul.f32 %v385_v61, %v357_v62 }
 0x254   :  { %v367_v6 = vadd.f32 %v366_v2, %v364_v4  ;;  %v389_v7 = vadd.f32 %v388_v3, %v386_v5 }
 0x256   :  { %v368_v10 = vmul.f32 %v367_v6, %v357_v62  ;;  %v390_v11 = vmul.f32 %v389_v7, %v357_v62 }
 0x258   :  { %v371_v12 = vadd.f32 %v370_v8, %v368_v10  ;;  %v393_v13 = vadd.f32 %v392_v9, %v390_v11 }
 0x25a   :  { %v372_v15 = vmul.f32 %v371_v12, %v357_v62  ;;  %v394_v17 = vmul.f32 %v393_v13, %v357_v62 }
 0x25c   :  { %v397_v18 = vadd.f32 %v396_v14, %v394_v17  ;;  %v375_v19 = vadd.f32 %v374_v16, %v372_v15 }
 0x25e   :  { %v398_v20 = vmul.f32 %v397_v18, %v357_v62  ;;  %v376_v22 = vmul.f32 %v375_v19, %v357_v62 }
 0x260   :  { %v399_v21 = vadd.f32 1.0, %v398_v20  ;;  %v379_v25 = vadd.f32 %v378_v23, %v376_v22 }
 0x262   :  { %v400_v24 = vmax.f32 %v399_v21, 1e-08  ;;  %v380_v26 = vmul.f32 %v379_v25, %v357_v62 }
 0x264   :  { %676 = vrcp.f32 %v400_v24  ;;  %v383_v28 = vadd.f32 %v382_v27, %v380_v26 }
 0x26e   :  { %v677_v29 = vpop.eup %676 }
 0x26f   :  { %v402_v30 = vmul.f32 %v677_v29, %v383_v28 }
 0x271   :  { %v403_v31 = vpack.c.bf16 %v402_v30, %v402_v30 }
 0x273   :  { %640 = vmatmul.mubr.bf16.vlgmr.msra.gmra.mrb[4].mxu0 %v403_v31 }
 0x346   :  { %v509_v33 = vpop.f32.mrb[4].mxu0 }
 0x347   :  { %v510_v34 = vadd.f32 %v565_v32, %v509_v33  ;;  %v641_v35 = vpop.f32.mrb[5].mxu0 }
 0x348   :  { %v512_v36 = vpop.f32.mrb[6].mxu0 }
 0x349   :  { %515 = vst [vmem:[#allocation17] sm:$0xff] %v510_v34  ;;  %v642_v37 = vpop.f32.mrb[7].mxu0 }
 0x34a   :  { %825 = shalt.err (!%p822_p0)
}
 0x34b   :  { %s826_s6 = scalar_lea.hbm %s1052_s11, 128 }
 0x34c   :  { %p827_p1 = scmp.ne.s32.totalorder %s1052_s11, %s826_s6  ;;  %p830_p2 = scmp.lt.u32.totalorder %s826_s6, %s1052_s11 }
 0x34e   :  { %p832_p3 = pnand %p830_p2, %p827_p1 }
 0x350   :  { %835 = shalt.err (!%p832_p3)
}
 0x351   :  { %525 = dma.vmem_to_hbm [thread:$0]  %s523_s8, 128, %s1052_s11, [#allocation4]  }
 0x352   :  { %848 = dma.done.wait [#allocation4], 128  }
 0x353   :  { %849 = vsyncadd [#allocation4], 4294967168 }
 0x354   :  { %529 = vsyncpa [#allocation3], 1 }
 0x355   :  { %530 = vsyncpa [#allocation7], 1 }
 0x356   :  { %531 = vsyncpa [#allocation10], 1 }
 0x357   :  { %532 = vsyncpa [#allocation4], 1 }
 0x358   :  { %533 = vsyncpa [#allocation5], 1 }
 0x359   :  { %534 = vsyncpa [#allocation13], 1 }
 0x35a   :  { %535 = vsyncpa [#allocation16], 1 }

</bundles_post_ra>
